<compile_context>
chip_gen: v7x
topology: tpu7x:2x2x1
jax: 0.10.0
libtpu: 0.0.40
codegen_flags: <defaults>
</compile_context>

<pallas_src>
import math

import jax
import jax.numpy as jnp
from jax.experimental import pallas as pl
from jax.experimental.pallas import tpu as pltpu


# ----------------------------------------------------------------------------
# Kernel
# ----------------------------------------------------------------------------
def _ffn_kernel(x_ref, w1_ref, b1_ref, w2_ref, b2_ref, o_ref):
    # x_ref : (TM, dim)     bf16
    # w1_ref: (dim, hidden) bf16     b1_ref: (1, hidden) f32
    # w2_ref: (hidden, dim) bf16     b2_ref: (1, dim)    f32
    # o_ref : (TM, dim)     f32
    h = jnp.dot(x_ref[...], w1_ref[...], preferred_element_type=jnp.float32)
    h = h + b1_ref[...]
    h = h * jax.nn.sigmoid(h)                                   # SiLU (f32)
    out = jnp.dot(h.astype(jnp.bfloat16), w2_ref[...],
                  preferred_element_type=jnp.float32)
    o_ref[...] = (out + b2_ref[...]).astype(o_ref.dtype)


# ----------------------------------------------------------------------------
# Wrapper
# ----------------------------------------------------------------------------
def feedforward_forward(x, params, *, block_rows=128):
    """x: (..., dim) float32.  params: dict(w1, b1, w2, b2) with w1:(dim,hidden),
    w2:(hidden,dim) (i.e. PyTorch Linear weights transposed - pure glue)."""
    *lead, dim = x.shape
    hidden = params["w1"].shape[1]
    M = math.prod(lead)

    TM = block_rows
    m_pad = pl.cdiv(M, TM) * TM

    x2 = x.reshape(M, dim)
    if m_pad != M:
        x2 = jnp.pad(x2, ((0, m_pad - M), (0, 0)))              # row padding (glue)

    # bf16 MXU operands (f32 accumulation inside the kernel).
    x_bf = x2.astype(jnp.bfloat16)
    w1 = params["w1"].astype(jnp.bfloat16)
    w2 = params["w2"].astype(jnp.bfloat16)
    b1 = params["b1"].reshape(1, hidden).astype(jnp.float32)
    b2 = params["b2"].reshape(1, dim).astype(jnp.float32)

    out = pl.pallas_call(
        _ffn_kernel,
        out_shape=jax.ShapeDtypeStruct((m_pad, dim), jnp.float32),
        grid_spec=pltpu.PrefetchScalarGridSpec(
            num_scalar_prefetch=0,
            grid=(m_pad // TM,),
            in_specs=[
                pl.BlockSpec((TM, dim), lambda i: (i, 0)),       # x row tile
                pl.BlockSpec((dim, hidden), lambda i: (0, 0)),   # w1 (resident)
                pl.BlockSpec((1, hidden), lambda i: (0, 0)),     # b1
                pl.BlockSpec((hidden, dim), lambda i: (0, 0)),   # w2 (resident)
                pl.BlockSpec((1, dim), lambda i: (0, 0)),        # b2
            ],
            out_specs=pl.BlockSpec((TM, dim), lambda i: (i, 0)),
        ),
        compiler_params=pltpu.CompilerParams(
            dimension_semantics=("parallel",),
        ),
    )(x_bf, w1, b1, w2, b2)

    if m_pad != M:
        out = out[:M]
    return out.reshape(*lead, dim)


# ----------------------------------------------------------------------------
# Parameters & references
# ----------------------------------------------------------------------------
def init_params(key, dim, hidden_dim):
    """Synthetic params matching FeedForward(dim, hidden_dim); weights stored
    as (in, out), i.e. the transpose of torch.nn.Linear.weight."""
    k1, k2, k3, k4 = jax.random.split(key, 4)
    w1 = jax.random.normal(k1, (dim, hidden_dim), jnp.float32) / jnp.sqrt(dim)
    b1 = 0.1 * jax.random.normal(k2, (hidden_dim,), jnp.float32)
    w2 = jax.random.normal(k3, (hidden_dim, dim), jnp.float32) / jnp.sqrt(hidden_dim)
    b2 = 0.1 * jax.random.normal(k4, (dim,), jnp.float32)
    return dict(w1=w1, b1=b1, w2=w2, b2=b2)


def feedforward_reference(x, params):
    """Pure-f32 JAX reference (PyTorch eval semantics, dropout = identity)."""
    h = x @ params["w1"] + params["b1"]
    h = h * jax.nn.sigmoid(h)
    return h @ params["w2"] + params["b2"]


def feedforward_reference_bf16(x, params):
    """Reference with the same bf16-input / f32-accumulate matmul numerics."""
    h = jnp.dot(x.astype(jnp.bfloat16), params["w1"].astype(jnp.bfloat16),
                preferred_element_type=jnp.float32) + params["b1"]
    h = h * jax.nn.sigmoid(h)
    return jnp.dot(h.astype(jnp.bfloat16), params["w2"].astype(jnp.bfloat16),
                   preferred_element_type=jnp.float32) + params["b2"]


# ----------------------------------------------------------------------------
# Demo / correctness check
# ----------------------------------------------------------------------------
if __name__ == "__main__":
    key = jax.random.PRNGKey(0)
    kx, kp = jax.random.split(key)

    # Small but lane-dense shapes; S=200 exercises the row-padding path
    # (M = 400 -> padded to 512 -> grid of 4 parallel row tiles).
    B, S, dim, hidden_dim = 2, 200, 128, 256
    x = jax.random.normal(kx, (B, S, dim), jnp.float32)
    params = init_params(kp, dim, hidden_dim)

    out = feedforward_forward(x, params, block_rows=128)
    out = jax.block_until_ready(out)
    assert out.shape == (B, S, dim), out.shape

    # Tight check vs a reference using identical bf16-MXU numerics.
    ref_bf16 = feedforward_reference_bf16(x, params)
    err_bf16 = float(jnp.max(jnp.abs(out - ref_bf16)))
    assert jnp.allclose(out, ref_bf16, atol=1e-2, rtol=1e-2), err_bf16

    # Loose check vs the full-f32 module semantics (bf16 quantization error).
    ref_f32 = feedforward_reference(x, params)
    err_f32 = float(jnp.max(jnp.abs(out - ref_f32)))
    assert jnp.allclose(out, ref_f32, atol=1e-1, rtol=1e-1), err_f32

    print("KERNEL_OK")
</pallas_src>

<mosaic_0001>
module attributes {stable_mosaic.version = 11 : i64} {
  func.func @_ffn_kernel(%arg0: i32, %arg1: memref<128x128xbf16, #tpu.memory_space<vmem>>, %arg2: memref<128x256xbf16, #tpu.memory_space<vmem>>, %arg3: memref<1x256xf32, #tpu.memory_space<vmem>>, %arg4: memref<256x128xbf16, #tpu.memory_space<vmem>>, %arg5: memref<1x128xf32, #tpu.memory_space<vmem>>, %arg6: memref<128x128xf32, #tpu.memory_space<vmem>>) attributes {dimension_semantics = [#tpu.dimension_semantics<parallel>], iteration_bounds = array<i64: 4>, scalar_prefetch = 0 : i64, scratch_operands = 0 : i64, tpu.core_type = #tpu.core_type<tc>, window_params = [{transform_indices = @transform_0, window_bounds = array<i64: 128, 128>}, {pipeline_mode = #tpu.pipeline_mode<synchronous>, transform_indices = @transform_1, window_bounds = array<i64: 128, 256>}, {pipeline_mode = #tpu.pipeline_mode<synchronous>, transform_indices = @transform_2, window_bounds = array<i64: 1, 256>}, {pipeline_mode = #tpu.pipeline_mode<synchronous>, transform_indices = @transform_3, window_bounds = array<i64: 256, 128>}, {pipeline_mode = #tpu.pipeline_mode<synchronous>, transform_indices = @transform_4, window_bounds = array<i64: 1, 128>}, {transform_indices = @transform_5, window_bounds = array<i64: 128, 128>}]} {
    %c0 = arith.constant 0 : index
    %c0_0 = arith.constant 0 : index
    %0 = vector.load %arg1[%c0, %c0_0] : memref<128x128xbf16, #tpu.memory_space<vmem>>, vector<128x128xbf16>
    %c0_1 = arith.constant 0 : index
    %c0_2 = arith.constant 0 : index
    %1 = vector.load %arg2[%c0_1, %c0_2] : memref<128x256xbf16, #tpu.memory_space<vmem>>, vector<128x256xbf16>
    %cst = arith.constant dense<0.000000e+00> : vector<128x256xf32>
    %2 = tpu.matmul %0, %1, %cst {dimension_numbers = #tpu.dot_dimension_numbers<[1], [0], [0], [1], [0, 0, 1, 1], [], []>} : vector<128x128xbf16>, vector<128x256xbf16>, vector<128x256xf32> -> vector<128x256xf32>
    %c0_3 = arith.constant 0 : index
    %c0_4 = arith.constant 0 : index
    %3 = vector.load %arg3[%c0_3, %c0_4] : memref<1x256xf32, #tpu.memory_space<vmem>>, vector<1x256xf32>
    %4 = vector.broadcast %3 : vector<1x256xf32> to vector<128x256xf32>
    %5 = arith.addf %2, %4 : vector<128x256xf32>
    %6 = arith.negf %5 : vector<128x256xf32>
    %7 = math.exp %6 : vector<128x256xf32>
    %cst_5 = arith.constant 1.000000e+00 : f32
    %8 = vector.broadcast %cst_5 : f32 to vector<128x256xf32>
    %9 = arith.addf %8, %7 : vector<128x256xf32>
    %10 = arith.divf %8, %9 : vector<128x256xf32>
    %11 = arith.mulf %5, %10 : vector<128x256xf32>
    %12 = arith.truncf %11 : vector<128x256xf32> to vector<128x256xbf16>
    %c0_6 = arith.constant 0 : index
    %c0_7 = arith.constant 0 : index
    %13 = vector.load %arg4[%c0_6, %c0_7] : memref<256x128xbf16, #tpu.memory_space<vmem>>, vector<256x128xbf16>
    %cst_8 = arith.constant dense<0.000000e+00> : vector<128x128xf32>
    %14 = tpu.matmul %12, %13, %cst_8 {dimension_numbers = #tpu.dot_dimension_numbers<[1], [0], [0], [1], [0, 0, 1, 1], [], []>} : vector<128x256xbf16>, vector<256x128xbf16>, vector<128x128xf32> -> vector<128x128xf32>
    %c0_9 = arith.constant 0 : index
    %c0_10 = arith.constant 0 : index
    %15 = vector.load %arg5[%c0_9, %c0_10] : memref<1x128xf32, #tpu.memory_space<vmem>>, vector<1x128xf32>
    %16 = vector.broadcast %15 : vector<1x128xf32> to vector<128x128xf32>
    %17 = arith.addf %14, %16 : vector<128x128xf32>
    %c0_11 = arith.constant 0 : index
    %c0_12 = arith.constant 0 : index
    %18 = vector.load %arg6[%c0_11, %c0_12] : memref<128x128xf32, #tpu.memory_space<vmem>>, vector<128x128xf32>
    tpu.vector_store %arg6[%c0_11, %c0_12], %17 {strides = array<i32>} : memref<128x128xf32, #tpu.memory_space<vmem>>, vector<128x128xf32>,
    return
  }
  func.func @transform_0(%arg0: i32) -> (i32, i32) {
    %c0_i32 = arith.constant 0 : i32
    %c0_i32_0 = arith.constant 0 : i32
    return %arg0, %c0_i32 : i32, i32
  }
  func.func @transform_1(%arg0: i32) -> (i32, i32) {
    %c0_i32 = arith.constant 0 : i32
    %c0_i32_0 = arith.constant 0 : i32
    %c0_i32_1 = arith.constant 0 : i32
    return %c0_i32, %c0_i32_0 : i32, i32
  }
  func.func @transform_2(%arg0: i32) -> (i32, i32) {
    %c0_i32 = arith.constant 0 : i32
    %c0_i32_0 = arith.constant 0 : i32
    %c0_i32_1 = arith.constant 0 : i32
    return %c0_i32, %c0_i32_0 : i32, i32
  }
  func.func @transform_3(%arg0: i32) -> (i32, i32) {
    %c0_i32 = arith.constant 0 : i32
    %c0_i32_0 = arith.constant 0 : i32
    %c0_i32_1 = arith.constant 0 : i32
    return %c0_i32, %c0_i32_0 : i32, i32
  }
  func.func @transform_4(%arg0: i32) -> (i32, i32) {
    %c0_i32 = arith.constant 0 : i32
    %c0_i32_0 = arith.constant 0 : i32
    %c0_i32_1 = arith.constant 0 : i32
    return %c0_i32, %c0_i32_0 : i32, i32
  }
  func.func @transform_5(%arg0: i32) -> (i32, i32) {
    %c0_i32 = arith.constant 0 : i32
    %c0_i32_0 = arith.constant 0 : i32
    return %arg0, %c0_i32 : i32, i32
  }
}

</mosaic_0001>

<bundles_post_ra>
// kernel: tpu_custom_call.1
= control target key start
LH: loop header
LB: loop body
LE: loop exit
PB: predicated region body
PF: predicated region fallthrough
CT: control target
= control target key end

     0   :  { %10 = vsyncpa [#allocation3], 0  ;;  %s2209_s0 = inlined_call_operand.hbm [shape: bf16[512,128], index: 0, kind: input, shape index: {}]   ;;  %s2210_s1 = inlined_call_operand.hbm [shape: bf16[128,256], index: 1, kind: input, shape index: {}]   ;;  %s2211_s2 = inlined_call_operand.vmem [shape: f32[1,256], index: 2, kind: input, shape index: {}]   ;;  %s2212_s3 = inlined_call_operand.hbm [shape: bf16[256,128], index: 3, kind: input, shape index: {}]   ;;  %s2213_s4 = inlined_call_operand.vmem [shape: f32[1,128], index: 4, kind: input, shape index: {}]   ;;  %s2214_s5 = inlined_call_operand.hbm [shape: f32[512,128], index: 5, kind: output, shape index: {}]  }
   0x1   :  { %12 = vsyncpa [#allocation3 + $0x1], 0 }
   0x2   :  { %13 = vsyncpa [#allocation6], 0 }
   0x3   :  { %14 = vsyncpa [#allocation4], 0 }
   0x4   :  { %16 = vsyncpa [#allocation4 + $0x1], 0  ;;  %s1760_s18 = smov 0   ;;  %s1762_s19 = smov 0  }
   0x5   :  { %s1764_s20 = smov 0   ;;  %s1766_s21 = smov 0  }
   0x6 LB: > { %s1781_s22 = sadd.s32 4294967295, %s1717_s21   ;;  %s1154_s23 = sadd.s32 4294967294, %s1717_s21   ;;  %s1717_s21 = sphi %s1766_s21, %s2233_s21   ;;  %s1713_s20 = sphi %s1764_s20, %s2232_s20   ;;  %s1709_s19 = sphi %s1762_s19, %s2231_s19   ;;  %s1705_s18 = sphi %s1760_s18, %s2230_s18  }
   0x7   : > { %p42_p0 = scmp.ne.s32.totalorder %s1709_s19, %s1705_s18  ;;  %p2215_p1 = scmp.eq.s32.totalorder %s1781_s22, 0 }
   0x8   : > { %p156_p3 = scmp.eq.s32.totalorder %s1154_s23, 3  ;;  %p1155_p5 = scmp.ge.s32.totalorder %s1717_s21, 1 }
   0x9   : > { %p1790_p4 = por %p2215_p1, %p42_p0  ;;  %p163_p7 = scmp.lt.s32.totalorder %s1717_s21, 5 }
   0xa   : > { %p1795_p6 = por %p156_p3, %p42_p0  ;;  %s1719_s27 = smov [#allocation5]  }
   0xb   : > { %s2218_s24 = scalar_select %p1790_p4, 1, 0 }
   0xc   : > { %s2219_s25 = scalar_select %p1795_p6, 1, 0 }
   0xd   : > { %p1800_p8 = pnand %p1155_p5, %p163_p7  ;;  %s175_s28 = sshll.u32 %s1719_s27, 4  ;;  %s176_s28 = int_to_ptr.vmem [resolvable:$true] %s175_s28 }
   0xe   : > { %s1720_s30 = smov [#allocation7]   ;;  %s1561_s9 = scalar_lea.hbm %s2210_s1, 2048 }
   0xf   : > { %s2220_s26 = scalar_select %p1800_p8, 1, 0 }
  0x10   : > { %p1323_p9 = pneg %p1800_p8  ;;  %s191_s6 = sshll.u32 %s1720_s30, 4  ;;  %s1812_s6 = int_to_ptr.vmem [resolvable:$true] %s191_s6 }
  0x11   : > { %p1562_p11 = scmp.ne.s32.totalorder %s2210_s1, %s1561_s9  ;;  %p1568_p3 = scmp.lt.u32.totalorder %s1561_s9, %s2210_s1 }
  0x12   : > { %p1808_p10 = pnand %p1323_p9, %p2215_p1 }
  0x14   : > { %p1563_p12 = pneg %p1808_p10 }
  0x16   : > { %p1564_p13 = pnand %p1563_p12, %p1562_p11 }
  0x18   : > { %p1565_p0 = pneg %p1564_p13 }
  0x1a   : > { %p1570_p5 = pnand %p1568_p3, %p1565_p0 }
  0x1c   : > { %1573 = shalt.err (!%p1570_p5)
}
  0x1d   : > { %s1574_s14 = scalar_lea.vmem %s176_s28, 2048  ;;  %p1582_p2 = scmp.lt.s32.totalorder %s176_s28, %s176_s28 }
  0x1e   : > { %p1575_p7 = scmp.ne.s32.totalorder %s176_s28, %s1574_s14  ;;  %p1583_p6 = scmp.lt.s32.totalorder %s1574_s14, %s1574_s14 }
  0x20   : > { %p1577_p9 = pnand %p1575_p7, %p1563_p12  ;;  %p1584_p4 = por %p1583_p6, %p1582_p2 }
  0x22   : > { %p1578_p1 = pneg %p1577_p9 }
  0x24   : > { %p1585_p8 = pnand %p1584_p4, %p1578_p1 }
  0x26   : > { %1588 = shalt.err (!%p1585_p8)
}
  0x27   : > { %s1721_s15 = smov 128   ;;  %s1722_s16 = smov 8  }
  0x28   : > { %1326 = dma.hbm_to_vmem [thread:$0]  (!%p1808_p10), %s2210_s1, 2048, %s176_s28, [#allocation6], %s1721_s15, %s1721_s15, %s1722_s16  }
  0x29   : > { %s1589_s7 = scalar_lea.hbm %s2212_s3, 2048 }
  0x2a   : > { %p1590_p11 = scmp.ne.s32.totalorder %s2212_s3, %s1589_s7  ;;  %p1596_p4 = scmp.lt.u32.totalorder %s1589_s7, %s2212_s3 }
  0x2c   : > { %p1592_p1 = pnand %p1590_p11, %p1563_p12 }
  0x2e   : > { %p1593_p2 = pneg %p1592_p1 }
  0x30   : > { %p1598_p6 = pnand %p1596_p4, %p1593_p2 }
  0x32   : > { %1601 = shalt.err (!%p1598_p6)
}
  0x33   : > { %s1602_s28 = scalar_lea.vmem %s1812_s6, 2048  ;;  %p1610_p3 = scmp.lt.s32.totalorder %s1812_s6, %s1812_s6 }
  0x34   : > { %p1603_p8 = scmp.ne.s32.totalorder %s1812_s6, %s1602_s28  ;;  %p1611_p5 = scmp.lt.s32.totalorder %s1602_s28, %s1602_s28 }
  0x36   : > { %p1605_p13 = pnand %p1603_p8, %p1563_p12  ;;  %p1612_p7 = por %p1611_p5, %p1610_p3 }
  0x38   : > { %p1606_p0 = pneg %p1605_p13 }
  0x3a   : > { %p1613_p9 = pnand %p1612_p7, %p1606_p0 }
  0x3c   : > { %1616 = shalt.err (!%p1613_p9)
}
  0x3d   : > { %s1723_s12 = smov 64   ;;  %s1724_s13 = smov 4  }
  0x3e   : > { %1329 = dma.hbm_to_vmem [thread:$0]  (!%p1808_p10), %s2212_s3, 2048, %s1812_s6, [#allocation6], %s1723_s12, %s1723_s12, %s1724_s13  }
  0x3f   : > { %s1865_s16 = sadd.s32 1, %s1717_s21   ;;  %s29_s23 = sadd.s32 1, %s1713_s20 }
  0x40   : > { %s26_s17 = ssub.s32 %s1717_s21, %s1865_s16  ;;  %p36_p11 = scmp.ne.s32.totalorder %s1713_s20, %s1709_s19 }
  0x41   : > { %p27_p12 = scmp.eq.s32.totalorder %s26_s17, 0  ;;  %p37_p1 = scmp.eq.s32.totalorder %s1717_s21, 0 }
  0x42   : > { %p2222_p4 = scmp.eq.s32.totalorder %s1781_s22, 3  ;;  %p1340_p8 = scmp.lt.s32.totalorder %s1717_s21, 4 }
  0x43   : > { %s1874_s27 = scalar_select %p27_p12, %s1713_s20, %s29_s23  }
  0x44   : > { %p38_p2 = por %p37_p1, %p36_p11  ;;  %p1878_p6 = por %p2222_p4, %p36_p11 }
  0x45   : > { %s208_s30 = sand.u32 1, %s1713_s20   ;;  %s1245_s6 = sshll.u32 %s1717_s21, 10 }
  0x46   : > { %s1159_s7 = sshll.u32 %s208_s30, 6  ;;  %s1888_s10 = scalar_lea.hbm %s2209_s0, %s1245_s6 }
  0x47   : > { %s212_s11 = scalar_lea.vmem [#allocation2], %s1159_s7  ;;  %p1892_p10 = pnand %p1340_p8, %p38_p2 }
  0x48   : > { %s219_s28 = sshll.u32 %s212_s11, 4  ;;  %s1896_s15 = scalar_lea.sflag [#allocation3], %s208_s30  ;;  %s1890_s28 = int_to_ptr.vmem [resolvable:$true] %s219_s28 }
  0x49   : > { %s1617_s17 = scalar_lea.hbm %s1888_s10, 1024  ;;  %p1619_p0 = pneg %p1892_p10 }
  0x4a   : > { %p1618_p13 = scmp.ne.s32.totalorder %s1888_s10, %s1617_s17  ;;  %s1622_s6 = scalar_lea.hbm %s2209_s0, 4096 }
  0x4b   : > { %p1623_p7 = scmp.lt.u32.totalorder %s1888_s10, %s2209_s0  ;;  %p1624_p9 = scmp.lt.u32.totalorder %s1622_s6, %s1617_s17 }
  0x4c   : > { %p1620_p3 = pnand %p1619_p0, %p1618_p13  ;;  %p1626_p11 = scmp.lt.u32.totalorder %s1617_s17, %s1888_s10 }
  0x4d   : > { %p1625_p12 = por %p1624_p9, %p1623_p7 }
  0x4e   : > { %p1621_p5 = pneg %p1620_p3 }
  0x4f   : > { %p1627_p1 = por %p1626_p11, %p1625_p12 }
  0x51   : > { %p1628_p2 = pnand %p1627_p1, %p1621_p5 }
  0x53   : > { %1631 = shalt.err (!%p1628_p2)
}
  0x54   : > { %s1632_s30 = scalar_lea.vmem %s1890_s28, 1024  ;;  %s1725_s11 = smov [#allocation2]  }
  0x55   : > { %p1633_p4 = scmp.ne.s32.totalorder %s1890_s28, %s1632_s30  ;;  %s1637_s23 = sshll.u32 %s1725_s11, 4  ;;  %s1638_s23 = int_to_ptr.vmem [resolvable:$false] %s1637_s23 }
  0x56   : > { %s1639_s7 = scalar_lea.vmem %s1638_s23, 2048  ;;  %p1640_p3 = scmp.lt.s32.totalorder %s1890_s28, %s1638_s23 }
  0x57   : > { %p1635_p8 = pnand %p1633_p4, %p1619_p0  ;;  %p1641_p7 = scmp.lt.s32.totalorder %s1639_s7, %s1632_s30 }
  0x59   : > { %p1636_p13 = pneg %p1635_p8  ;;  %p1642_p9 = por %p1641_p7, %p1640_p3 }
  0x5b   : > { %p1643_p12 = pnand %p1642_p9, %p1636_p13 }
  0x5d   : > { %1646 = shalt.err (!%p1643_p12)
}
  0x5e   : > { %1333 = dma.hbm_to_vmem [thread:$0]  (!%p1892_p10), %s1888_s10, 1024, %s1890_s28, %s1896_s15, %s1723_s12, %s1723_s12, %s1724_s13  }
  0x5f   : > { %p2225_p0 = scmp.ne.s32.totalorder %s2220_s26, 0 }
  0x60   : > { %s1930_s17 = sand.u32 (!%p2225_p0), 1, %s1709_s19   ;;  %p2226_p5 = scmp.ne.s32.totalorder (!%p2225_p0), %s2218_s24, 0 }
  0x61   : > { %231 = sbr.rel (%p2225_p0) target bundleno = 682 (0x2aa), region = 40  ;;  %s1163_s6 = sshll.u32 (!%p2225_p0), %s1930_s17, 6 }
  0x62   : > { %s234_s8 = scalar_lea.sflag (!%p2225_p0), [#allocation3], %s1930_s17  ;;  %s1934_s9 = scalar_lea.vmem (!%p2225_p0), [#allocation2], %s1163_s6 }
  0x68   : > { %1692 = dma.done.wait (%p2226_p5), %s234_s8, 1024  }
  0x69   : > { %1694 = vsyncadd (%p2226_p5), %s234_s8, 4294966272  ;;  %p2227_p10 = scmp.eq.s32.totalorder %s1781_s22, 0 }
  0x6b   : > { %1696 = dma.done.wait (%p2227_p10), [#allocation6], 4096   ;;  %p2228_p11 = pmov %p2227_p10 }
  0x6c   : > { %v1726_v0 = vmov 0   ;;  %v1385_v1 = vld [vmem:[#allocation5 + $0x4] ss:$8 sps:$4 sm:$0xff]   ;;  %v1387_v2 = vld [vmem:[#allocation5] ss:$8 sps:$4 sm:$0xff]   ;;  %v1411_v19 = vld [vmem:[%s1934_s9 + $0x10] sm:$0xff]   ;;  %v309_v41 = vlaneseq }
  0x6d   : > { %1698 = vsyncadd (%p2228_p11), [#allocation6], 4294963200  ;;  %479 = vmatprep.mubr.bf16.mxu0 %v1726_v0  ;;  %447 = vmatprep.subr.bf16.mxu0 %v1385_v1  ;;  %v1388_v3 = vld [vmem:[#allocation5 + $0x14] ss:$8 sps:$4 sm:$0xff]   ;;  %v1390_v4 = vld [vmem:[#allocation5 + $0x10] ss:$8 sps:$4 sm:$0xff]  }
  0x6e   : > { %448 = vmatpush1.bf16.msra.mxu0 %v1387_v2  ;;  %v1391_v5 = vld [vmem:[#allocation5 + $0x24] ss:$8 sps:$4 sm:$0xff]   ;;  %v1393_v6 = vld [vmem:[#allocation5 + $0x20] ss:$8 sps:$4 sm:$0xff]   ;;  %v1394_v7 = vld [vmem:[#allocation5 + $0x34] ss:$8 sps:$4 sm:$0xff]  }
  0x6f   : > { %449 = vmatprep.subr.bf16.mxu0 %v1388_v3  ;;  %v1396_v8 = vld [vmem:[#allocation5 + $0x30] ss:$8 sps:$4 sm:$0xff]   ;;  %v1397_v9 = vld [vmem:[#allocation5 + $0x44] ss:$8 sps:$4 sm:$0xff]   ;;  %v1399_v10 = vld [vmem:[#allocation5 + $0x40] ss:$8 sps:$4 sm:$0xff]  }
  0x70   : > { %v1400_v11 = vld [vmem:[#allocation5 + $0x54] ss:$8 sps:$4 sm:$0xff]   ;;  %v1402_v12 = vld [vmem:[#allocation5 + $0x50] ss:$8 sps:$4 sm:$0xff]   ;;  %v1403_v13 = vld [vmem:[#allocation5 + $0x64] ss:$8 sps:$4 sm:$0xff]  }
  0x71   : > { %v1405_v14 = vld [vmem:[#allocation5 + $0x60] ss:$8 sps:$4 sm:$0xff]   ;;  %v1406_v15 = vld [vmem:[#allocation5 + $0x74] ss:$8 sps:$4 sm:$0xff]   ;;  %v1408_v16 = vld [vmem:[#allocation5 + $0x70] ss:$8 sps:$4 sm:$0xff]  }
  0x72   : > { %450 = vmatpush1.bf16.msra.mxu0 %v1390_v4  ;;  %v1409_v17 = vld [vmem:[%s1934_s9] sm:$0xff]   ;;  %v1410_v18 = vld [vmem:[%s1934_s9 + $0x8] sm:$0xff]   ;;  %v1412_v20 = vld [vmem:[%s1934_s9 + $0x18] sm:$0xff]   ;;  %v310_v42 = vshrl.u32 %v309_v41, 7  ;;  %s1166_s12 = sshll.u32 %s1930_s17, 7  ;;  %s1246_s14 = sshll.u32 %s1781_s22, 11 }
  0x73   : > { %451 = vmatprep.subr.bf16.mxu0 %v1391_v5  ;;  %v1413_v21 = vld [vmem:[%s1934_s9 + $0x20] sm:$0xff]   ;;  %v1414_v22 = vld [vmem:[%s1934_s9 + $0x28] sm:$0xff]   ;;  %v1415_v23 = vld [vmem:[%s1934_s9 + $0x30] sm:$0xff]   ;;  %s2126_s28 = scalar_lea.vmem [#allocation8], %s1166_s12  ;;  %s2161_s23 = scalar_lea.hbm %s2214_s5, %s1246_s14 }
  0x74   : > { %v1416_v24 = vld [vmem:[%s1934_s9 + $0x38] sm:$0xff]   ;;  %v1417_v25 = vld [vmem:[#allocation7 + $0x40] sm:$0xff]   ;;  %v1419_v27 = vld [vmem:[#allocation7 + $0x48] sm:$0xff]   ;;  %v311_v43 = vsub.s32 0, %v310_v42  ;;  %v315_v45 = vsub.s32 1, %v310_v42  ;;  %s1062_s15 = sshll.u32 %s2126_s28, 4  ;;  %s2163_s15 = int_to_ptr.vmem [resolvable:$true] %s1062_s15 }
  0x75   : > { %v1418_v26 = vld [vmem:[#allocation7] sm:$0xff]   ;;  %1247 = vmatprep.subr.bf16.mxu1 %v1417_v25  ;;  %v1420_v28 = vld [vmem:[#allocation7 + $0x8] sm:$0xff]   ;;  %v1421_v29 = vld [vmem:[#allocation7 + $0x50] sm:$0xff]   ;;  %s1049_s22 = scalar_lea.sflag [#allocation4], %s1930_s17  ;;  %s1647_s7 = scalar_lea.vmem %s2163_s15, 2048 }
  0x76   : > { %452 = vmatpush1.bf16.msra.mxu0 %v1393_v6  ;;  %1248 = vmatpush3.bf16.msra.mxu1 %v1418_v26  ;;  %v1422_v30 = vld [vmem:[#allocation7 + $0x10] sm:$0xff]   ;;  %v1423_v31 = vld [vmem:[#allocation7 + $0x58] sm:$0xff]   ;;  %v1425_v33 = vld [vmem:[#allocation7 + $0x60] sm:$0xff]   ;;  %p1648_p1 = scmp.ne.s32.totalorder %s2163_s15, %s1647_s7  ;;  %s1727_s6 = smov [#allocation8]  }
  0x77   : > { %453 = vmatprep.subr.bf16.mxu0 %v1394_v7  ;;  %1249 = vmatprep.subr.bf16.mxu1 %v1419_v27  ;;  %v1424_v32 = vld [vmem:[#allocation7 + $0x18] sm:$0xff]   ;;  %v1426_v34 = vld [vmem:[#allocation7 + $0x20] sm:$0xff]   ;;  %v1427_v35 = vld [vmem:[#allocation7 + $0x68] sm:$0xff]   ;;  %s1651_s8 = sshll.u32 %s1727_s6, 4  ;;  %s1652_s8 = int_to_ptr.vmem [resolvable:$false] %s1651_s8 }
  0x78   : > { %v1428_v36 = vld [vmem:[#allocation7 + $0x28] sm:$0xff]   ;;  %v1429_v37 = vld [vmem:[#allocation7 + $0x70] sm:$0xff]   ;;  %v1431_v39 = vld [vmem:[#allocation7 + $0x78] sm:$0xff]   ;;  %p1649_p2 = pnand %p1648_p1, %p1878_p6  ;;  %s1653_s9 = scalar_lea.vmem %s1652_s8, 4096 }
  0x79   : > { %v1430_v38 = vld [vmem:[#allocation7 + $0x30] sm:$0xff]   ;;  %v1432_v40 = vld [vmem:[#allocation7 + $0x38] sm:$0xff]   ;;  %v307_v44 = vld [vmem:[%s2211_s2] sm:$0x3]  ;;  %p1654_p8 = scmp.lt.s32.totalorder %s2163_s15, %s1652_s8  ;;  %p1655_p13 = scmp.lt.s32.totalorder %s1653_s9, %s1647_s7 }
  0x7a   : > { %454 = vmatpush1.bf16.msra.mxu0 %v1396_v8  ;;  %1250 = vmatpush3.bf16.msra.mxu1 %v1420_v28  ;;  %v1955_v46 = vrot.slane %v307_v44, %v311_v43  ;;  %v1957_v47 = vrot.slane %v307_v44, %v315_v45  ;;  %p1650_p4 = pneg %p1649_p2 }
  0x7b   : > { %455 = vmatprep.subr.bf16.mxu0 %v1397_v9  ;;  %1251 = vmatprep.subr.bf16.mxu1 %v1421_v29  ;;  %p1656_p3 = por %p1655_p13, %p1654_p8 }
  0x7d   : > { %p1657_p7 = pnand %p1656_p3, %p1650_p4 }
  0x7e   : > { %456 = vmatpush1.bf16.msra.mxu0 %v1399_v10  ;;  %1252 = vmatpush3.bf16.msra.mxu1 %v1422_v30 }
  0x7f   : > { %457 = vmatprep.subr.bf16.mxu0 %v1400_v11  ;;  %1253 = vmatprep.subr.bf16.mxu1 %v1423_v31 }
  0x82   : > { %458 = vmatpush1.bf16.msra.mxu0 %v1402_v12  ;;  %1254 = vmatpush3.bf16.msra.mxu1 %v1424_v32 }
  0x83   : > { %459 = vmatprep.subr.bf16.mxu0 %v1403_v13  ;;  %1255 = vmatprep.subr.bf16.mxu1 %v1425_v33 }
  0x86   : > { %460 = vmatpush1.bf16.msra.mxu0 %v1405_v14  ;;  %1256 = vmatpush3.bf16.msra.mxu1 %v1426_v34 }
  0x87   : > { %461 = vmatprep.subr.bf16.mxu0 %v1406_v15  ;;  %1257 = vmatprep.subr.bf16.mxu1 %v1427_v35 }
  0x8a   : > { %462 = vmatpush1.bf16.msra.mxu0 %v1408_v16  ;;  %1258 = vmatpush3.bf16.msra.mxu1 %v1428_v36 }
  0x8b   : > { %1259 = vmatprep.subr.bf16.mxu1 %v1429_v37 }
  0x8d   : > { %480 = vmatmul.mubr.bf16.vlgmr.msra.gmra.mrb[0].mxu0 %v1409_v17 }
  0x8e   : > { %489 = vmatprep.mubr.bf16.mxu0 %v1726_v0  ;;  %1260 = vmatpush3.bf16.msra.mxu1 %v1430_v38 }
  0x8f   : > { %1261 = vmatprep.subr.bf16.mxu1 %v1431_v39 }
  0x92   : > { %1262 = vmatpush3.bf16.msra.mxu1 %v1432_v40 }
  0x95   : > { %490 = vmatmul.mubr.bf16.gmra.mrb[4].mxu0 %v1410_v18 }
  0x96   : > { %499 = vmatprep.mubr.bf16.mxu0 %v1726_v0 }
  0x9d   : > { %500 = vmatmul.mubr.bf16.gmra.mrb[8].mxu0 %v1411_v19 }
  0x9e   : > { %509 = vmatprep.mubr.bf16.mxu0 %v1726_v0 }
  0xa5   : > { %510 = vmatmul.mubr.bf16.gmra.mrb[12].mxu0 %v1412_v20 }
  0xa6   : > { %519 = vmatprep.mubr.bf16.mxu0 %v1726_v0 }
  0xad   : > { %520 = vmatmul.mubr.bf16.gmra.mrb[16].mxu0 %v1413_v21 }
  0xae   : > { %529 = vmatprep.mubr.bf16.mxu0 %v1726_v0 }
  0xb5   : > { %530 = vmatmul.mubr.bf16.gmra.mrb[20].mxu0 %v1414_v22 }
  0xb6   : > { %539 = vmatprep.mubr.bf16.mxu0 %v1726_v0 }
  0xbd   : > { %540 = vmatmul.mubr.bf16.gmra.mrb[24].mxu0 %v1415_v23 }
  0xbe   : > { %549 = vmatprep.mubr.bf16.mxu0 %v1726_v0 }
  0xc5   : > { %550 = vmatmul.mubr.bf16.gmra.mrb[28].mxu0 %v1416_v24 }
 0x160   : > { %v481_v48 = vpop.f32.mrb[0].mxu0 }
 0x161   : > { %v1960_v49 = vadd.f32 %v481_v48, %v1955_v46  ;;  %v483_v50 = vpop.f32.mrb[1].mxu0 }
 0x162   : > { %v1963_v51 = vadd.f32 %v483_v50, %v1957_v47  ;;  %v485_v52 = vpop.f32.mrb[2].mxu0 }
 0x163   : > { %v1191_v53 = vmul.f32 -1.442695, %v1960_v49  ;;  %v1967_v54 = vadd.f32 %v485_v52, %v1955_v46  ;;  %v487_v55 = vpop.f32.mrb[3].mxu0 }
 0x164   : > { %v1192_v56 = vmul.f32 -1.442695, %v1963_v51  ;;  %v1971_v57 = vadd.f32 %v487_v55, %v1957_v47 }
 0x165   : > { %1433 = vpow2.f32 %v1191_v53  ;;  %v1193_v58 = vmul.f32 -1.442695, %v1967_v54 }
 0x166   : > { %1435 = vpow2.f32 %v1192_v56  ;;  %v1194_v59 = vmul.f32 -1.442695, %v1971_v57 }
 0x167   : > { %1437 = vpow2.f32 %v1193_v58 }
 0x168   : > { %1439 = vpow2.f32 %v1194_v59  ;;  %v491_v60 = vpop.f32.mrb[4].mxu0 }
 0x169   : > { %v1976_v61 = vadd.f32 %v491_v60, %v1955_v46  ;;  %v493_v62 = vpop.f32.mrb[5].mxu0 }
 0x16a   : > { %v1979_v63 = vadd.f32 %v493_v62, %v1957_v47  ;;  %v495_v0 = vpop.f32.mrb[6].mxu0 }
 0x16b   : > { %v1195_v1 = vmul.f32 -1.442695, %v1976_v61  ;;  %v1983_v2 = vadd.f32 %v495_v0, %v1955_v46  ;;  %v497_v3 = vpop.f32.mrb[7].mxu0 }
 0x16c   : > { %v1196_v4 = vmul.f32 -1.442695, %v1979_v63  ;;  %v1987_v5 = vadd.f32 %v497_v3, %v1957_v47 }
 0x16d   : > { %1441 = vpow2.f32 %v1195_v1  ;;  %v1197_v6 = vmul.f32 -1.442695, %v1983_v2 }
 0x16e   : > { %1443 = vpow2.f32 %v1196_v4  ;;  %v1198_v7 = vmul.f32 -1.442695, %v1987_v5 }
 0x16f   : > { %v1434_v8 = vpop.eup %1433  ;;  %1445 = vpow2.f32 %v1197_v6 }
 0x170   : > { %v1436_v9 = vpop.eup %1435  ;;  %v656_v10 = vadd.f32 1.0, %v1434_v8  ;;  %1447 = vpow2.f32 %v1198_v7  ;;  %v501_v11 = vpop.f32.mrb[8].mxu0 }
 0x171   : > { %v1438_v12 = vpop.eup %1437  ;;  %v657_v13 = vadd.f32 1.0, %v1436_v9  ;;  %v1992_v14 = vadd.f32 %v501_v11, %v1955_v46  ;;  %v503_v15 = vpop.f32.mrb[9].mxu0 }
 0x172   : > { %v1440_v16 = vpop.eup %1439  ;;  %1449 = vrcp.f32 %v656_v10  ;;  %v658_v17 = vadd.f32 1.0, %v1438_v12  ;;  %v1995_v18 = vadd.f32 %v503_v15, %v1957_v47  ;;  %v505_v19 = vpop.f32.mrb[10].mxu0 }
 0x173   : > { %1451 = vrcp.f32 %v657_v13  ;;  %v659_v20 = vadd.f32 1.0, %v1440_v16  ;;  %v1199_v21 = vmul.f32 -1.442695, %v1992_v14  ;;  %v1999_v22 = vadd.f32 %v505_v19, %v1955_v46  ;;  %v507_v23 = vpop.f32.mrb[11].mxu0 }
 0x174   : > { %1453 = vrcp.f32 %v658_v17  ;;  %v1200_v24 = vmul.f32 -1.442695, %v1995_v18  ;;  %v2003_v25 = vadd.f32 %v507_v23, %v1957_v47 }
 0x175   : > { %1455 = vrcp.f32 %v659_v20  ;;  %v1201_v26 = vmul.f32 -1.442695, %v1999_v22 }
 0x176   : > { %1457 = vpow2.f32 %v1199_v21  ;;  %v1202_v27 = vmul.f32 -1.442695, %v2003_v25 }
 0x177   : > { %v1442_v28 = vpop.eup %1441  ;;  %1459 = vpow2.f32 %v1200_v24 }
 0x178   : > { %v1444_v29 = vpop.eup %1443  ;;  %v660_v30 = vadd.f32 1.0, %v1442_v28  ;;  %1461 = vpow2.f32 %v1201_v26  ;;  %v511_v31 = vpop.f32.mrb[12].mxu0 }
 0x179   : > { %v1446_v32 = vpop.eup %1445  ;;  %v661_v33 = vadd.f32 1.0, %v1444_v29  ;;  %1463 = vpow2.f32 %v1202_v27  ;;  %v2008_v34 = vadd.f32 %v511_v31, %v1955_v46  ;;  %v513_v35 = vpop.f32.mrb[13].mxu0 }
 0x17a   : > { %v1448_v36 = vpop.eup %1447  ;;  %1465 = vrcp.f32 %v660_v30  ;;  %v662_v37 = vadd.f32 1.0, %v1446_v32  ;;  %v2011_v38 = vadd.f32 %v513_v35, %v1957_v47  ;;  %v515_v39 = vpop.f32.mrb[14].mxu0 }
 0x17b   : > { %1467 = vrcp.f32 %v661_v33  ;;  %v663_v40 = vadd.f32 1.0, %v1448_v36  ;;  %v1203_v41 = vmul.f32 -1.442695, %v2008_v34  ;;  %v2015_v42 = vadd.f32 %v515_v39, %v1955_v46  ;;  %v517_v43 = vpop.f32.mrb[15].mxu0 }
 0x17c   : > { %v1450_v44 = vpop.eup %1449  ;;  %1469 = vrcp.f32 %v662_v37  ;;  %v1204_v45 = vmul.f32 -1.442695, %v2011_v38  ;;  %v2019_v48 = vadd.f32 %v517_v43, %v1957_v47 }
 0x17d   : > { %v1452_v50 = vpop.eup %1451  ;;  %1471 = vrcp.f32 %v663_v40  ;;  %v1205_v52 = vmul.f32 -1.442695, %v2015_v42  ;;  %v752_v58 = vmul.f32 %v1450_v44, %v1960_v49 }
 0x17e   : > { %v1454_v53 = vpop.eup %1453  ;;  %1473 = vpow2.f32 %v1203_v41  ;;  %v1206_v55 = vmul.f32 -1.442695, %v2019_v48  ;;  %v753_v0 = vmul.f32 %v1452_v50, %v1963_v51 }
 0x17f   : > { %v1456_v56 = vpop.eup %1455  ;;  %v754_v59 = vmul.f32 %v1454_v53, %v1967_v54  ;;  %1475 = vpow2.f32 %v1204_v45 }
 0x180   : > { %v1458_v60 = vpop.eup %1457  ;;  %1477 = vpow2.f32 %v1205_v52  ;;  %v521_v62 = vpop.f32.mrb[16].mxu0  ;;  %v755_v1 = vmul.f32 %v1456_v56, %v1971_v57 }
 0x181   : > { %v1460_v3 = vpop.eup %1459  ;;  %v664_v4 = vadd.f32 1.0, %v1458_v60  ;;  %1479 = vpow2.f32 %v1206_v55  ;;  %v2028_v6 = vadd.f32 %v521_v62, %v1955_v46  ;;  %v523_v7 = vpop.f32.mrb[17].mxu0  ;;  %v784_v8 = vpack.c.bf16 %v754_v59, %v752_v58 }
 0x182   : > { %v1462_v9 = vpop.eup %1461  ;;  %v665_v49 = vadd.f32 1.0, %v1460_v3  ;;  %v2031_v54 = vadd.f32 %v523_v7, %v1957_v47  ;;  %v525_v10 = vpop.f32.mrb[18].mxu0  ;;  %v785_v11 = vpack.c.bf16 %v755_v1, %v753_v0 }
 0x183   : > { %v1464_v12 = vpop.eup %1463  ;;  %1481 = vrcp.f32 %v664_v4  ;;  %v666_v51 = vadd.f32 1.0, %v1462_v9  ;;  %v1207_v57 = vmul.f32 -1.442695, %v2028_v6  ;;  %v2035_v13 = vadd.f32 %v525_v10, %v1955_v46  ;;  %v527_v15 = vpop.f32.mrb[19].mxu0 }
 0x184   : > { %v1466_v16 = vpop.eup %1465  ;;  %1483 = vrcp.f32 %v665_v49  ;;  %v667_v17 = vadd.f32 1.0, %v1464_v12  ;;  %v1208_v19 = vmul.f32 -1.442695, %v2031_v54  ;;  %v2039_v20 = vadd.f32 %v527_v15, %v1957_v47  ;;  %967 = vmatprep.mubr.bf16.mxu1 %v785_v11 }
 0x185   : > { %v1468_v21 = vpop.eup %1467  ;;  %1485 = vrcp.f32 %v666_v51  ;;  %v1209_v23 = vmul.f32 -1.442695, %v2035_v13  ;;  %968 = vmatmul.mubr.bf16.vlgmr.msra.gmra.mrb[0].mxu1 %v784_v8  ;;  %v756_v28 = vmul.f32 %v1466_v16, %v1976_v61 }
 0x186   : > { %v1470_v24 = vpop.eup %1469  ;;  %1487 = vrcp.f32 %v667_v17  ;;  %v1210_v26 = vmul.f32 -1.442695, %v2039_v20  ;;  %v757_v31 = vmul.f32 %v1468_v21, %v1979_v63 }
 0x187   : > { %v1472_v27 = vpop.eup %1471  ;;  %v758_v29 = vmul.f32 %v1470_v24, %v1983_v2  ;;  %1489 = vpow2.f32 %v1207_v57 }
 0x188   : > { %v1474_v30 = vpop.eup %1473  ;;  %v759_v32 = vmul.f32 %v1472_v27, %v1987_v5  ;;  %1491 = vpow2.f32 %v1208_v19  ;;  %v531_v33 = vpop.f32.mrb[20].mxu0 }
 0x189   : > { %v1476_v35 = vpop.eup %1475  ;;  %v668_v36 = vadd.f32 1.0, %v1474_v30  ;;  %1493 = vpow2.f32 %v1209_v23  ;;  %v2048_v37 = vadd.f32 %v531_v33, %v1955_v46  ;;  %v533_v39 = vpop.f32.mrb[21].mxu0  ;;  %v786_v40 = vpack.c.bf16 %v758_v29, %v756_v28 }
 0x18a   : > { %v1478_v41 = vpop.eup %1477  ;;  %v669_v61 = vadd.f32 1.0, %v1476_v35  ;;  %1495 = vpow2.f32 %v1210_v26  ;;  %v2051_v2 = vadd.f32 %v533_v39, %v1957_v47  ;;  %v535_v43 = vpop.f32.mrb[22].mxu0  ;;  %v787_v63 = vpack.c.bf16 %v759_v32, %v757_v31 }
 0x18b   : > { %v1480_v44 = vpop.eup %1479  ;;  %1497 = vrcp.f32 %v668_v36  ;;  %v670_v5 = vadd.f32 1.0, %v1478_v41  ;;  %v1211_v45 = vmul.f32 -1.442695, %v2048_v37  ;;  %v2055_v50 = vadd.f32 %v535_v43, %v1955_v46  ;;  %v537_v52 = vpop.f32.mrb[23].mxu0 }
 0x18c   : > { %1499 = vrcp.f32 %v669_v61  ;;  %v671_v53 = vadd.f32 1.0, %v1480_v44  ;;  %v1212_v55 = vmul.f32 -1.442695, %v2051_v2  ;;  %v2059_v56 = vadd.f32 %v537_v52, %v1957_v47  ;;  %975 = vmatprep.mubr.bf16.mxu1 %v787_v63 }
 0x18d   : > { %v1482_v58 = vpop.eup %1481  ;;  %1501 = vrcp.f32 %v670_v5  ;;  %v1213_v59 = vmul.f32 -1.442695, %v2055_v50  ;;  %976 = vmatmul.mubr.bf16.gmra.mrb[4].mxu1 %v786_v40 }
 0x18e   : > { %v1484_v60 = vpop.eup %1483  ;;  %1503 = vrcp.f32 %v671_v53  ;;  %v1214_v62 = vmul.f32 -1.442695, %v2059_v56  ;;  %v760_v3 = vmul.f32 %v1482_v58, %v1992_v14 }
 0x18f   : > { %v1486_v0 = vpop.eup %1485  ;;  %1505 = vpow2.f32 %v1211_v45  ;;  %v761_v9 = vmul.f32 %v1484_v60, %v1995_v18 }
 0x190   : > { %v1488_v1 = vpop.eup %1487  ;;  %v762_v4 = vmul.f32 %v1486_v0, %v1999_v22  ;;  %1507 = vpow2.f32 %v1212_v55  ;;  %v541_v7 = vpop.f32.mrb[24].mxu0 }
 0x191   : > { %v1490_v8 = vpop.eup %1489  ;;  %v763_v49 = vmul.f32 %v1488_v1, %v2003_v25  ;;  %1509 = vpow2.f32 %v1213_v59  ;;  %v2068_v10 = vadd.f32 %v541_v7, %v1955_v46  ;;  %v543_v11 = vpop.f32.mrb[25].mxu0 }
 0x192   : > { %v1492_v12 = vpop.eup %1491  ;;  %v672_v51 = vadd.f32 1.0, %v1490_v8  ;;  %1511 = vpow2.f32 %v1214_v62  ;;  %v2071_v57 = vadd.f32 %v543_v11, %v1957_v47  ;;  %v545_v14 = vpop.f32.mrb[26].mxu0  ;;  %v788_v22 = vpack.c.bf16 %v762_v4, %v760_v3 }
 0x193   : > { %v1494_v15 = vpop.eup %1493  ;;  %v673_v16 = vadd.f32 1.0, %v1492_v12  ;;  %v2074_v17 = vadd.f32 %v545_v14, %v1955_v46  ;;  %v547_v18 = vpop.f32.mrb[27].mxu0  ;;  %v789_v25 = vpack.c.bf16 %v763_v49, %v761_v9  ;;  %v1215_v23 = vmul.f32 -1.442695, %v2068_v10 }
 0x194   : > { %v1496_v19 = vpop.eup %1495  ;;  %1513 = vrcp.f32 %v672_v51  ;;  %v674_v21 = vadd.f32 1.0, %v1494_v15  ;;  %v2078_v24 = vadd.f32 %v547_v18, %v1957_v47  ;;  %v1216_v28 = vmul.f32 -1.442695, %v2071_v57 }
 0x195   : > { %v1498_v26 = vpop.eup %1497  ;;  %1515 = vrcp.f32 %v673_v16  ;;  %v675_v27 = vadd.f32 1.0, %v1496_v19  ;;  %983 = vmatprep.mubr.bf16.mxu1 %v789_v25  ;;  %v1217_v30 = vmul.f32 -1.442695, %v2074_v17 }
 0x196   : > { %v1500_v29 = vpop.eup %1499  ;;  %1517 = vrcp.f32 %v674_v21  ;;  %984 = vmatmul.mubr.bf16.gmra.mrb[8].mxu1 %v788_v22  ;;  %v1218_v32 = vmul.f32 -1.442695, %v2078_v24  ;;  %v764_v35 = vmul.f32 %v1498_v26, %v2008_v34 }
 0x197   : > { %v1502_v31 = vpop.eup %1501  ;;  %1519 = vrcp.f32 %v675_v27 }
 0x198   : > { %v1504_v33 = vpop.eup %1503  ;;  %v766_v36 = vmul.f32 %v1502_v31, %v2015_v42  ;;  %1521 = vpow2.f32 %v1215_v23  ;;  %v551_v39 = vpop.f32.mrb[28].mxu0  ;;  %v765_v42 = vmul.f32 %v1500_v29, %v2011_v38 }
 0x199   : > { %v1506_v40 = vpop.eup %1505  ;;  %v767_v41 = vmul.f32 %v1504_v33, %v2019_v48  ;;  %1523 = vpow2.f32 %v1216_v28  ;;  %v2087_v61 = vadd.f32 %v551_v39, %v1955_v46  ;;  %v553_v43 = vpop.f32.mrb[29].mxu0 }
 0x19a   : > { %v1508_v63 = vpop.eup %1507  ;;  %v676_v44 = vadd.f32 1.0, %v1506_v40  ;;  %1525 = vpow2.f32 %v1217_v30  ;;  %v2090_v5 = vadd.f32 %v553_v43, %v1957_v47  ;;  %v555_v45 = vpop.f32.mrb[30].mxu0  ;;  %v790_v34 = vpack.c.bf16 %v766_v36, %v764_v35 }
 0x19b   : > { %v1510_v52 = vpop.eup %1509  ;;  %v677_v53 = vadd.f32 1.0, %v1508_v63  ;;  %1527 = vpow2.f32 %v1218_v32  ;;  %v2094_v48 = vadd.f32 %v555_v45, %v1955_v46  ;;  %v557_v55 = vpop.f32.mrb[31].mxu0  ;;  %v1219_v60 = vmul.f32 -1.442695, %v2087_v61 }
 0x19c   : > { %v1512_v58 = vpop.eup %1511  ;;  %1529 = vrcp.f32 %v676_v44  ;;  %v678_v59 = vadd.f32 1.0, %v1510_v52  ;;  %v2098_v62 = vadd.f32 %v557_v55, %v1957_v47  ;;  %v1220_v1 = vmul.f32 -1.442695, %v2090_v5 }
 0x19d   : > { %1531 = vrcp.f32 %v677_v53  ;;  %v679_v0 = vadd.f32 1.0, %v1512_v58  ;;  %v791_v3 = vpack.c.bf16 %v767_v41, %v765_v42  ;;  %v1221_v4 = vmul.f32 -1.442695, %v2094_v48 }
 0x19e   : > { %v1514_v38 = vpop.eup %1513  ;;  %1533 = vrcp.f32 %v678_v59  ;;  %v1222_v7 = vmul.f32 -1.442695, %v2098_v62 }
 0x19f   : > { %v1516_v46 = vpop.eup %1515  ;;  %1535 = vrcp.f32 %v679_v0  ;;  %991 = vmatprep.mubr.bf16.mxu1 %v791_v3  ;;  %v768_v47 = vmul.f32 %v1514_v38, %v2028_v6  ;;  %v2123_v3 = vld [vmem:[%s2213_s4] ss:$0 sm:$0xff] }
 0x1a0   : > { %v1518_v8 = vpop.eup %1517  ;;  %1537 = vpow2.f32 %v1219_v60  ;;  %992 = vmatmul.mubr.bf16.gmra.mrb[12].mxu1 %v790_v34  ;;  %v769_v12 = vmul.f32 %v1516_v46, %v2031_v54 }
 0x1a1   : > { %v1520_v9 = vpop.eup %1519  ;;  %v770_v49 = vmul.f32 %v1518_v8, %v2035_v13  ;;  %1539 = vpow2.f32 %v1220_v1 }
 0x1a2   : > { %v1522_v11 = vpop.eup %1521  ;;  %v771_v51 = vmul.f32 %v1520_v9, %v2039_v20  ;;  %1541 = vpow2.f32 %v1221_v4 }
 0x1a3   : > { %v1524_v14 = vpop.eup %1523  ;;  %v680_v22 = vadd.f32 1.0, %v1522_v11  ;;  %1543 = vpow2.f32 %v1222_v7  ;;  %v792_v15 = vpack.c.bf16 %v770_v49, %v768_v47 }
 0x1a4   : > { %v1526_v16 = vpop.eup %1525  ;;  %v681_v18 = vadd.f32 1.0, %v1524_v14  ;;  %v793_v25 = vpack.c.bf16 %v771_v51, %v769_v12 }
 0x1a5   : > { %v1528_v19 = vpop.eup %1527  ;;  %1545 = vrcp.f32 %v680_v22  ;;  %v682_v21 = vadd.f32 1.0, %v1526_v16 }
 0x1a6   : > { %v1530_v6 = vpop.eup %1529  ;;  %1547 = vrcp.f32 %v681_v18  ;;  %v683_v13 = vadd.f32 1.0, %v1528_v19  ;;  %999 = vmatprep.mubr.bf16.mxu1 %v793_v25 }
 0x1a7   : > { %v1532_v23 = vpop.eup %1531  ;;  %1549 = vrcp.f32 %v682_v21  ;;  %v772_v26 = vmul.f32 %v1530_v6, %v2048_v37 }
 0x1a8   : > { %v1534_v54 = vpop.eup %1533  ;;  %1551 = vrcp.f32 %v683_v13  ;;  %1000 = vmatmul.mubr.bf16.gmra.mrb[16].mxu1 %v792_v15  ;;  %v773_v29 = vmul.f32 %v1532_v23, %v2051_v2 }
 0x1a9   : > { %v1536_v20 = vpop.eup %1535  ;;  %v774_v27 = vmul.f32 %v1534_v54, %v2055_v50 }
 0x1aa   : > { %v1538_v28 = vpop.eup %1537  ;;  %v775_v30 = vmul.f32 %v1536_v20, %v2059_v56 }
 0x1ab   : > { %v1540_v31 = vpop.eup %1539  ;;  %v684_v32 = vadd.f32 1.0, %v1538_v28  ;;  %v794_v33 = vpack.c.bf16 %v774_v27, %v772_v26 }
 0x1ac   : > { %v1542_v35 = vpop.eup %1541  ;;  %v685_v36 = vadd.f32 1.0, %v1540_v31  ;;  %v795_v39 = vpack.c.bf16 %v775_v30, %v773_v29 }
 0x1ad   : > { %v1544_v40 = vpop.eup %1543  ;;  %1553 = vrcp.f32 %v684_v32  ;;  %v686_v41 = vadd.f32 1.0, %v1542_v35 }
 0x1ae   : > { %1555 = vrcp.f32 %v685_v36  ;;  %v687_v43 = vadd.f32 1.0, %v1544_v40  ;;  %1007 = vmatprep.mubr.bf16.mxu1 %v795_v39 }
 0x1af   : > { %v1546_v37 = vpop.eup %1545  ;;  %1557 = vrcp.f32 %v686_v41 }
 0x1b0   : > { %v1548_v50 = vpop.eup %1547  ;;  %1559 = vrcp.f32 %v687_v43  ;;  %1008 = vmatmul.mubr.bf16.gmra.mrb[20].mxu1 %v794_v33  ;;  %v776_v56 = vmul.f32 %v1546_v37, %v2068_v10 }
 0x1b1   : > { %v1550_v2 = vpop.eup %1549  ;;  %v777_v45 = vmul.f32 %v1548_v50, %v2071_v57 }
 0x1b2   : > { %v1552_v63 = vpop.eup %1551  ;;  %v778_v44 = vmul.f32 %v1550_v2, %v2074_v17 }
 0x1b3   : > { %v779_v34 = vmul.f32 %v1552_v63, %v2078_v24 }
 0x1b4   : > { %v796_v52 = vpack.c.bf16 %v778_v44, %v776_v56 }
 0x1b5   : > { %v797_v42 = vpack.c.bf16 %v779_v34, %v777_v45 }
 0x1b7   : > { %v1554_v53 = vpop.eup %1553  ;;  %1015 = vmatprep.mubr.bf16.mxu1 %v797_v42 }
 0x1b8   : > { %v1556_v55 = vpop.eup %1555  ;;  %1016 = vmatmul.mubr.bf16.gmra.mrb[24].mxu1 %v796_v52  ;;  %v780_v60 = vmul.f32 %v1554_v53, %v2087_v61 }
 0x1b9   : > { %v1558_v58 = vpop.eup %1557  ;;  %v781_v10 = vmul.f32 %v1556_v55, %v2090_v5 }
 0x1ba   : > { %v1560_v59 = vpop.eup %1559  ;;  %v782_v0 = vmul.f32 %v1558_v58, %v2094_v48 }
 0x1bb   : > { %v783_v17 = vmul.f32 %v1560_v59, %v2098_v62 }
 0x1bc   : > { %v798_v57 = vpack.c.bf16 %v782_v0, %v780_v60 }
 0x1bd   : > { %v799_v1 = vpack.c.bf16 %v783_v17, %v781_v10 }
 0x1bf   : > { %1023 = vmatprep.mubr.bf16.mxu1 %v799_v1 }
 0x1c0   : > { %1024 = vmatmul.mubr.bf16.gmra.mrb[28].mxu1 %v798_v57 }
 0x258   : > { %v1263_v24 = vpop.f32.mrb[0].mxu1 }
 0x259   : > { %v1264_v38 = vpop.f32.mrb[1].mxu1 }
 0x25a   : > { %v1265_v4 = vadd.f32 %v1264_v38, %v1263_v24  ;;  %v1266_v61 = vpop.f32.mrb[2].mxu1 }
 0x25b   : > { %v1267_v46 = vpop.f32.mrb[3].mxu1 }
 0x25c   : > { %v970_v48 = vadd.f32 %v1265_v4, %v2123_v3  ;;  %v1268_v5 = vadd.f32 %v1267_v46, %v1266_v61 }
 0x25e   : > { %1032 = vst [vmem:[%s2126_s28] sm:$0xff] %v970_v48  ;;  %v973_v62 = vadd.f32 %v1268_v5, %v2123_v3 }
 0x260   : > { %1033 = vst [vmem:[%s2126_s28 + $0x8] sm:$0xff] %v973_v62  ;;  %v1269_v7 = vpop.f32.mrb[4].mxu1 }
 0x261   : > { %v1270_v8 = vpop.f32.mrb[5].mxu1 }
 0x262   : > { %v1271_v9 = vadd.f32 %v1270_v8, %v1269_v7  ;;  %v1272_v47 = vpop.f32.mrb[6].mxu1 }
 0x263   : > { %v1273_v49 = vpop.f32.mrb[7].mxu1 }
 0x264   : > { %v978_v11 = vadd.f32 %v1271_v9, %v2123_v3  ;;  %v1274_v12 = vadd.f32 %v1273_v49, %v1272_v47 }
 0x266   : > { %1034 = vst [vmem:[%s2126_s28 + $0x10] sm:$0xff] %v978_v11  ;;  %v981_v51 = vadd.f32 %v1274_v12, %v2123_v3 }
 0x268   : > { %1035 = vst [vmem:[%s2126_s28 + $0x18] sm:$0xff] %v981_v51 }
 0x269   : > { %v1275_v14 = vpop.f32.mrb[8].mxu1 }
 0x26a   : > { %v1276_v22 = vpop.f32.mrb[9].mxu1 }
 0x26b   : > { %v1277_v15 = vadd.f32 %v1276_v22, %v1275_v14  ;;  %v1278_v16 = vpop.f32.mrb[10].mxu1 }
 0x26c   : > { %v1279_v18 = vpop.f32.mrb[11].mxu1 }
 0x26d   : > { %v986_v25 = vadd.f32 %v1277_v15, %v2123_v3  ;;  %v1280_v19 = vadd.f32 %v1279_v18, %v1278_v16 }
 0x26f   : > { %1036 = vst [vmem:[%s2126_s28 + $0x20] sm:$0xff] %v986_v25  ;;  %v989_v21 = vadd.f32 %v1280_v19, %v2123_v3 }
 0x271   : > { %1037 = vst [vmem:[%s2126_s28 + $0x28] sm:$0xff] %v989_v21 }
 0x273   : > { %v1281_v6 = vpop.f32.mrb[12].mxu1 }
 0x274   : > { %v1282_v13 = vpop.f32.mrb[13].mxu1 }
 0x275   : > { %v1283_v23 = vadd.f32 %v1282_v13, %v1281_v6  ;;  %v1284_v54 = vpop.f32.mrb[14].mxu1 }
 0x276   : > { %v1285_v20 = vpop.f32.mrb[15].mxu1 }
 0x277   : > { %v994_v26 = vadd.f32 %v1283_v23, %v2123_v3  ;;  %v1286_v27 = vadd.f32 %v1285_v20, %v1284_v54 }
 0x279   : > { %1038 = vst [vmem:[%s2126_s28 + $0x30] sm:$0xff] %v994_v26  ;;  %v997_v28 = vadd.f32 %v1286_v27, %v2123_v3 }
 0x27b   : > { %1039 = vst [vmem:[%s2126_s28 + $0x38] sm:$0xff] %v997_v28  ;;  %v1287_v29 = vpop.f32.mrb[16].mxu1 }
 0x27c   : > { %v1288_v30 = vpop.f32.mrb[17].mxu1 }
 0x27d   : > { %v1289_v31 = vadd.f32 %v1288_v30, %v1287_v29  ;;  %v1290_v32 = vpop.f32.mrb[18].mxu1 }
 0x27e   : > { %v1291_v33 = vpop.f32.mrb[19].mxu1 }
 0x27f   : > { %v1002_v35 = vadd.f32 %v1289_v31, %v2123_v3  ;;  %v1292_v36 = vadd.f32 %v1291_v33, %v1290_v32 }
 0x281   : > { %1040 = vst [vmem:[%s2126_s28 + $0x40] sm:$0xff] %v1002_v35  ;;  %v1005_v39 = vadd.f32 %v1292_v36, %v2123_v3 }
 0x283   : > { %1041 = vst [vmem:[%s2126_s28 + $0x48] sm:$0xff] %v1005_v39  ;;  %v1293_v40 = vpop.f32.mrb[20].mxu1 }
 0x284   : > { %v1294_v41 = vpop.f32.mrb[21].mxu1 }
 0x285   : > { %v1295_v43 = vadd.f32 %v1294_v41, %v1293_v40  ;;  %v1296_v37 = vpop.f32.mrb[22].mxu1 }
 0x286   : > { %v1297_v50 = vpop.f32.mrb[23].mxu1 }
 0x287   : > { %v1010_v2 = vadd.f32 %v1295_v43, %v2123_v3  ;;  %v1298_v63 = vadd.f32 %v1297_v50, %v1296_v37 }
 0x289   : > { %1042 = vst [vmem:[%s2126_s28 + $0x50] sm:$0xff] %v1010_v2  ;;  %v1013_v56 = vadd.f32 %v1298_v63, %v2123_v3 }
 0x28b   : > { %1043 = vst [vmem:[%s2126_s28 + $0x58] sm:$0xff] %v1013_v56  ;;  %v1299_v44 = vpop.f32.mrb[24].mxu1 }
 0x28c   : > { %v1300_v45 = vpop.f32.mrb[25].mxu1 }
 0x28d   : > { %v1301_v34 = vadd.f32 %v1300_v45, %v1299_v44  ;;  %v1302_v52 = vpop.f32.mrb[26].mxu1 }
 0x28e   : > { %v1303_v42 = vpop.f32.mrb[27].mxu1 }
 0x28f   : > { %v1018_v53 = vadd.f32 %v1301_v34, %v2123_v3  ;;  %v1304_v55 = vadd.f32 %v1303_v42, %v1302_v52 }
 0x291   : > { %1044 = vst [vmem:[%s2126_s28 + $0x60] sm:$0xff] %v1018_v53  ;;  %v1021_v58 = vadd.f32 %v1304_v55, %v2123_v3 }
 0x293   : > { %1045 = vst [vmem:[%s2126_s28 + $0x68] sm:$0xff] %v1021_v58  ;;  %v1305_v59 = vpop.f32.mrb[28].mxu1 }
 0x294   : > { %v1306_v60 = vpop.f32.mrb[29].mxu1 }
 0x295   : > { %v1307_v0 = vadd.f32 %v1306_v60, %v1305_v59  ;;  %v1308_v10 = vpop.f32.mrb[30].mxu1 }
 0x296   : > { %v1309_v17 = vpop.f32.mrb[31].mxu1 }
 0x297   : > { %v1026_v57 = vadd.f32 %v1307_v0, %v2123_v3  ;;  %v1310_v1 = vadd.f32 %v1309_v17, %v1308_v10 }
 0x299   : > { %1046 = vst [vmem:[%s2126_s28 + $0x70] sm:$0xff] %v1026_v57  ;;  %v1029_v24 = vadd.f32 %v1310_v1, %v2123_v3 }
 0x29b   : > { %1047 = vst [vmem:[%s2126_s28 + $0x78] sm:$0xff] %v1029_v24 }
 0x29c   : > { %1660 = shalt.err (!%p1657_p7)
}
 0x29d   : > { %s1661_s24 = scalar_lea.hbm %s2161_s23, 2048  ;;  %s1665_s13 = scalar_lea.hbm %s2214_s5, 8192 }
 0x29e   : > { %p1662_p9 = scmp.ne.s32.totalorder %s2161_s23, %s1661_s24  ;;  %p1666_p5 = scmp.lt.u32.totalorder %s2161_s23, %s2214_s5 }
 0x29f   : > { %p1667_p10 = scmp.lt.u32.totalorder %s1665_s13, %s1661_s24  ;;  %p1669_p1 = scmp.lt.u32.totalorder %s1661_s24, %s2161_s23 }
 0x2a0   : > { %p1663_p12 = pnand %p1662_p9, %p1878_p6 }
 0x2a1   : > { %p1668_p11 = por %p1667_p10, %p1666_p5 }
 0x2a2   : > { %p1664_p0 = pneg %p1663_p12 }
 0x2a3   : > { %p1670_p2 = por %p1669_p1, %p1668_p11 }
 0x2a5   : > { %p1671_p4 = pnand %p1670_p2, %p1664_p0 }
 0x2a7   : > { %1674 = shalt.err (!%p1671_p4)
}
 0x2a8   : > { %s1728_s14 = smov 128   ;;  %s1729_s30 = smov 8  }
 0x2a9   : > { %1321 = dma.vmem_to_hbm [thread:$0]  (%p1878_p6), %s2163_s15, 2048, %s2161_s23, %s1049_s22, %s1728_s14, %s1728_s14, %s1729_s30  }
 0x2aa PF: > { %p1343_p8 = scmp.ge.s32.totalorder %s1717_s21, 2  ;;  %s1077_s11 = sand.u32 1, %s1705_s18  }
 0x2ab   : > { %p2229_p13 = scmp.ne.s32.totalorder %s2219_s25, 0  ;;  %s1078_s7 = scalar_lea.sflag [#allocation4], %s1077_s11 }
 0x2ad   : > { %p1335_p3 = pnand %p1343_p8, %p2229_p13 }
 0x2af   : > { %1700 = dma.done.wait (!%p1335_p3), %s1078_s7, 2048  }
 0x2b0   : > { %1702 = vsyncadd (!%p1335_p3), %s1078_s7, 4294965248  ;;  %p19_p7 = scmp.ge.s32.totalorder %s1865_s16, 6   ;;  %s2230_s18 = smov %s1709_s19 }
 0x2b1   : > { %s2231_s19 = smov %s1713_s20  ;;  %s2232_s20 = smov %s1874_s27 }
 0x2b2   : > { %s2233_s21 = smov %s1865_s16  ;;  %21 = sbr.rel (!%p19_p7) target bundleno = 6 (0x6), region = 93 }
 0x2b9   :  { %1083 = vsyncpa [#allocation3], 1 }
 0x2ba   :  { %1085 = vsyncpa [#allocation3 + $0x1], 1 }
 0x2bb   :  { %1086 = vsyncpa [#allocation6], 1 }
 0x2bc   :  { %1087 = vsyncpa [#allocation4], 1 }
 0x2bd   :  { %1089 = vsyncpa [#allocation4 + $0x1], 1 }

</bundles_post_ra>
